<compile_context>
chip_gen: v7x
topology: tpu7x:2x2x1
jax: 0.10.0
libtpu: 0.0.40
codegen_flags: <defaults>
</compile_context>

<pallas_src>
import jax
import jax.numpy as jnp
from jax.experimental import pallas as pl
from jax.experimental.pallas import tpu as pltpu


def scoring_kernel(v_ref, q_ref, wv_ref, bv_ref, wq_ref, bq_ref, o_ref):
    # v_ref: (Bt, K, Dv) tile; q_ref: full (B, Dq) array (resident).
    Bt, K, Dv = v_ref.shape
    S = wv_ref.shape[1]

    # --- v projection: fold (Bt, K) -> Bt*K rows, single MXU matmul ---------
    # (Merging leading axes is layout-free when K % 8 == 0; otherwise it may
    # cost a small VMEM relayout but stays correct.)
    v2 = v_ref[...].reshape(Bt * K, Dv)
    v_proj = jnp.dot(v2, wv_ref[...], preferred_element_type=jnp.float32)
    v_proj = jnp.maximum(v_proj + bv_ref[...], 0.0)            # (Bt*K, S)

    # --- q projection: one Bt-row matmul for this batch tile ---------------
    row0 = pl.multiple_of(pl.program_id(0) * Bt, Bt)
    q_blk = q_ref[pl.ds(row0, Bt), :]                          # (Bt, Dq)
    q_proj = jnp.dot(q_blk, wq_ref[...], preferred_element_type=jnp.float32)
    q_proj = jnp.maximum(q_proj + bq_ref[...], 0.0)            # (Bt, S)

    # --- elementwise score, q_proj broadcast over K (VPU) -------------------
    s = v_proj.reshape(Bt, K, S) * q_proj[:, None, :]          # (Bt, K, S)
    o_ref[...] = s.astype(o_ref.dtype)

    # TODO(synk): training-mode dropout (v_drop/q_drop/s_drop) not implemented;
    # eval-mode dropout is identity, which matches nn.Dropout at inference.


def _pick_batch_tile(B, K, target_rows=256):
    """Batch tile so the folded LHS has ~target_rows rows per grid step
    (256 fills the v6e/v7x MXU; use 128 for v5e).  Must divide B evenly."""
    if B * K <= target_rows:
        return B
    bt = max(1, target_rows // max(K, 1))
    while B % bt:
        bt -= 1
    return bt


def scoring_function(v, q, wv, bv, wq, bq, *, target_rows=256):
    """v:[B,K,Dv], q:[B,Dq], wv:[Dv,S], bv:[1,S], wq:[Dq,S], bq:[1,S] -> [B,K,S]."""
    B, K, Dv = v.shape
    _, Dq = q.shape
    S = wv.shape[1]
    Bt = _pick_batch_tile(B, K, target_rows)
    grid = (B // Bt,)

    return pl.pallas_call(
        scoring_kernel,
        out_shape=jax.ShapeDtypeStruct((B, K, S), v.dtype),
        grid_spec=pltpu.PrefetchScalarGridSpec(
            num_scalar_prefetch=0,
            grid=grid,
            in_specs=[
                pl.BlockSpec((Bt, K, Dv), lambda i: (i, 0, 0)),  # v batch-tile
                pl.BlockSpec((B, Dq), lambda i: (0, 0)),         # q, untiled/resident
                pl.BlockSpec((Dv, S), lambda i: (0, 0)),         # Wv (resident)
                pl.BlockSpec((1, S), lambda i: (0, 0)),          # bv
                pl.BlockSpec((Dq, S), lambda i: (0, 0)),         # Wq (resident)
                pl.BlockSpec((1, S), lambda i: (0, 0)),          # bq
            ],
            out_specs=pl.BlockSpec((Bt, K, S), lambda i: (i, 0, 0)),
        ),
        compiler_params=pltpu.CompilerParams(
            dimension_semantics=("parallel",)),  # shards batch tiles across v7x TCs
    )(v, q, wv, bv, wq, bq)


if __name__ == "__main__":
    # Small shapes consistent with the forward:
    #   batch=2, k=8 (objects), q_dim=32, v_dim=64, score_dim=128
    B, K, Dq, Dv, S = 2, 8, 32, 64, 128

    key = jax.random.PRNGKey(0)
    k1, k2, k3, k4, k5, k6 = jax.random.split(key, 6)
    v = jax.random.normal(k1, (B, K, Dv), jnp.float32)
    q = jax.random.normal(k2, (B, Dq), jnp.float32)
    # Deterministic synthetic parameters (Linear weights stored as [in, out]).
    wv = jax.random.normal(k3, (Dv, S), jnp.float32) * 0.05
    bv = jax.random.normal(k4, (1, S), jnp.float32) * 0.05
    wq = jax.random.normal(k5, (Dq, S), jnp.float32) * 0.05
    bq = jax.random.normal(k6, (1, S), jnp.float32) * 0.05

    out = scoring_function(v, q, wv, bv, wq, bq)
    out = jax.block_until_ready(out)

    # Pure-JAX reference check.
    v_proj_ref = jnp.maximum(v @ wv + bv[0], 0.0)
    q_proj_ref = jnp.maximum(q @ wq + bq[0], 0.0)
    ref = v_proj_ref * q_proj_ref[:, None, :]
    assert out.shape == (B, K, S)
    assert jnp.allclose(out, ref, atol=1e-5, rtol=1e-5), "mismatch vs reference"

    print("KERNEL_OK")
</pallas_src>

<mosaic_0001>
module attributes {stable_mosaic.version = 11 : i64} {
  func.func @scoring_kernel(%arg0: i32, %arg1: memref<2x8x64xf32, #tpu.memory_space<vmem>>, %arg2: memref<2x32xf32, #tpu.memory_space<vmem>>, %arg3: memref<64x128xf32, #tpu.memory_space<vmem>>, %arg4: memref<1x128xf32, #tpu.memory_space<vmem>>, %arg5: memref<32x128xf32, #tpu.memory_space<vmem>>, %arg6: memref<1x128xf32, #tpu.memory_space<vmem>>, %arg7: memref<2x8x128xf32, #tpu.memory_space<vmem>>) attributes {dimension_semantics = [#tpu.dimension_semantics<parallel>], iteration_bounds = array<i64: 1>, scalar_prefetch = 0 : i64, scratch_operands = 0 : i64, tpu.core_type = #tpu.core_type<tc>, window_params = [{transform_indices = @transform_0, window_bounds = array<i64: 2, 8, 64>}, {pipeline_mode = #tpu.pipeline_mode<synchronous>, transform_indices = @transform_1, window_bounds = array<i64: 2, 32>}, {pipeline_mode = #tpu.pipeline_mode<synchronous>, transform_indices = @transform_2, window_bounds = array<i64: 64, 128>}, {pipeline_mode = #tpu.pipeline_mode<synchronous>, transform_indices = @transform_3, window_bounds = array<i64: 1, 128>}, {pipeline_mode = #tpu.pipeline_mode<synchronous>, transform_indices = @transform_4, window_bounds = array<i64: 32, 128>}, {pipeline_mode = #tpu.pipeline_mode<synchronous>, transform_indices = @transform_5, window_bounds = array<i64: 1, 128>}, {transform_indices = @transform_6, window_bounds = array<i64: 2, 8, 128>}]} {
    %c0 = arith.constant 0 : index
    %c0_0 = arith.constant 0 : index
    %c0_1 = arith.constant 0 : index
    %0 = vector.load %arg1[%c0, %c0_0, %c0_1] : memref<2x8x64xf32, #tpu.memory_space<vmem>>, vector<2x8x64xf32>
    %1 = vector.shape_cast %0 : vector<2x8x64xf32> to vector<16x64xf32>
    %c0_2 = arith.constant 0 : index
    %c0_3 = arith.constant 0 : index
    %2 = vector.load %arg3[%c0_2, %c0_3] : memref<64x128xf32, #tpu.memory_space<vmem>>, vector<64x128xf32>
    %cst = arith.constant dense<0.000000e+00> : vector<16x128xf32>
    %3 = tpu.matmul %1, %2, %cst {dimension_numbers = #tpu.dot_dimension_numbers<[1], [0], [0], [1], [0, 0, 1, 1], [], []>} : vector<16x64xf32>, vector<64x128xf32>, vector<16x128xf32> -> vector<16x128xf32>
    %c0_4 = arith.constant 0 : index
    %c0_5 = arith.constant 0 : index
    %4 = vector.load %arg4[%c0_4, %c0_5] : memref<1x128xf32, #tpu.memory_space<vmem>>, vector<1x128xf32>
    %5 = vector.broadcast %4 : vector<1x128xf32> to vector<16x128xf32>
    %6 = arith.addf %3, %5 : vector<16x128xf32>
    %cst_6 = arith.constant 0.000000e+00 : f32
    %7 = vector.broadcast %cst_6 : f32 to vector<16x128xf32>
    %8 = arith.maximumf %6, %7 : vector<16x128xf32>
    %c2_i32 = arith.constant 2 : i32
    %9 = arith.muli %arg0, %c2_i32 : i32
    %10 = tpu.assume_multiple %9, 2 : i32
    %11 = arith.index_cast %10 : i32 to index
    %c0_7 = arith.constant 0 : index
    %12 = vector.load %arg2[%11, %c0_7] : memref<2x32xf32, #tpu.memory_space<vmem>>, vector<2x32xf32>
    %c0_8 = arith.constant 0 : index
    %c0_9 = arith.constant 0 : index
    %13 = vector.load %arg5[%c0_8, %c0_9] : memref<32x128xf32, #tpu.memory_space<vmem>>, vector<32x128xf32>
    %cst_10 = arith.constant dense<0.000000e+00> : vector<2x128xf32>
    %14 = tpu.matmul %12, %13, %cst_10 {dimension_numbers = #tpu.dot_dimension_numbers<[1], [0], [0], [1], [0, 0, 1, 1], [], []>} : vector<2x32xf32>, vector<32x128xf32>, vector<2x128xf32> -> vector<2x128xf32>
    %c0_11 = arith.constant 0 : index
    %c0_12 = arith.constant 0 : index
    %15 = vector.load %arg6[%c0_11, %c0_12] : memref<1x128xf32, #tpu.memory_space<vmem>>, vector<1x128xf32>
    %16 = vector.broadcast %15 : vector<1x128xf32> to vector<2x128xf32>
    %17 = arith.addf %14, %16 : vector<2x128xf32>
    %cst_13 = arith.constant 0.000000e+00 : f32
    %18 = vector.broadcast %cst_13 : f32 to vector<2x128xf32>
    %19 = arith.maximumf %17, %18 : vector<2x128xf32>
    %20 = vector.shape_cast %8 : vector<16x128xf32> to vector<2x8x128xf32>
    %21 = vector.shape_cast %19 : vector<2x128xf32> to vector<2x1x128xf32>
    %22 = vector.broadcast %21 : vector<2x1x128xf32> to vector<2x8x128xf32>
    %23 = arith.mulf %20, %22 : vector<2x8x128xf32>
    %c0_14 = arith.constant 0 : index
    %c0_15 = arith.constant 0 : index
    %c0_16 = arith.constant 0 : index
    %24 = vector.load %arg7[%c0_14, %c0_15, %c0_16] : memref<2x8x128xf32, #tpu.memory_space<vmem>>, vector<2x8x128xf32>
    tpu.vector_store %arg7[%c0_14, %c0_15, %c0_16], %23 {strides = array<i32>} : memref<2x8x128xf32, #tpu.memory_space<vmem>>, vector<2x8x128xf32>,
    return
  }
  func.func @transform_0(%arg0: i32) -> (i32, i32, i32) {
    %c0_i32 = arith.constant 0 : i32
    %c0_i32_0 = arith.constant 0 : i32
    %c0_i32_1 = arith.constant 0 : i32
    return %arg0, %c0_i32, %c0_i32_0 : i32, i32, i32
  }
  func.func @transform_1(%arg0: i32) -> (i32, i32) {
    %c0_i32 = arith.constant 0 : i32
    %c0_i32_0 = arith.constant 0 : i32
    %c0_i32_1 = arith.constant 0 : i32
    return %c0_i32, %c0_i32_0 : i32, i32
  }
  func.func @transform_2(%arg0: i32) -> (i32, i32) {
    %c0_i32 = arith.constant 0 : i32
    %c0_i32_0 = arith.constant 0 : i32
    %c0_i32_1 = arith.constant 0 : i32
    return %c0_i32, %c0_i32_0 : i32, i32
  }
  func.func @transform_3(%arg0: i32) -> (i32, i32) {
    %c0_i32 = arith.constant 0 : i32
    %c0_i32_0 = arith.constant 0 : i32
    %c0_i32_1 = arith.constant 0 : i32
    return %c0_i32, %c0_i32_0 : i32, i32
  }
  func.func @transform_4(%arg0: i32) -> (i32, i32) {
    %c0_i32 = arith.constant 0 : i32
    %c0_i32_0 = arith.constant 0 : i32
    %c0_i32_1 = arith.constant 0 : i32
    return %c0_i32, %c0_i32_0 : i32, i32
  }
  func.func @transform_5(%arg0: i32) -> (i32, i32) {
    %c0_i32 = arith.constant 0 : i32
    %c0_i32_0 = arith.constant 0 : i32
    %c0_i32_1 = arith.constant 0 : i32
    return %c0_i32, %c0_i32_0 : i32, i32
  }
  func.func @transform_6(%arg0: i32) -> (i32, i32, i32) {
    %c0_i32 = arith.constant 0 : i32
    %c0_i32_0 = arith.constant 0 : i32
    %c0_i32_1 = arith.constant 0 : i32
    return %arg0, %c0_i32, %c0_i32_0 : i32, i32, i32
  }
}

</mosaic_0001>

<bundles_post_ra>
// kernel: tpu_custom_call.1
= control target key start
LH: loop header
LB: loop body
LE: loop exit
PB: predicated region body
PF: predicated region fallthrough
CT: control target
= control target key end

     0   :  { %11 = vsyncpa [#allocation3], 0  ;;  %s609_s0 = inlined_call_operand.hbm [shape: f32[2,8,64], index: 0, kind: input, shape index: {}]   ;;  %s610_s1 = inlined_call_operand.vmem [shape: f32[2,32], index: 1, kind: input, shape index: {}]   ;;  %s611_s2 = inlined_call_operand.hbm [shape: f32[64,128], index: 2, kind: input, shape index: {}]   ;;  %s612_s3 = inlined_call_operand.vmem [shape: f32[1,128], index: 3, kind: input, shape index: {}]   ;;  %s613_s4 = inlined_call_operand.hbm [shape: f32[32,128], index: 4, kind: input, shape index: {}]   ;;  %s614_s5 = inlined_call_operand.vmem [shape: f32[1,128], index: 5, kind: input, shape index: {}]   ;;  %s615_s6 = inlined_call_operand.hbm [shape: f32[2,8,128], index: 6, kind: output, shape index: {}]  }
   0x1   :  { %12 = vsyncpa [#allocation6], 0 }
   0x2   :  { %13 = vsyncpa [#allocation4], 0  ;;  %s486_s21 = smov [#allocation5]   ;;  %s487_s23 = smov [#allocation2]  }
   0x3   :  { %s33_s22 = sshll.u32 %s486_s21, 4  ;;  %s19_s24 = sshll.u32 %s487_s23, 4  ;;  %s34_s22 = int_to_ptr.vmem [resolvable:$true] %s33_s22  ;;  %s531_s24 = int_to_ptr.vmem [resolvable:$true] %s19_s24 }
   0x4   :  { %s392_s27 = scalar_lea.hbm %s611_s2, 1024 }
   0x5   :  { %p393_p0 = scmp.ne.s32.totalorder %s611_s2, %s392_s27  ;;  %p396_p1 = scmp.lt.u32.totalorder %s392_s27, %s611_s2 }
   0x7   :  { %p398_p2 = pnand %p396_p1, %p393_p0 }
   0x9   :  { %401 = shalt.err (!%p398_p2)
}
   0xa   :  { %s402_s8 = scalar_lea.vmem %s34_s22, 1024  ;;  %p407_p4 = scmp.lt.s32.totalorder %s34_s22, %s34_s22 }
   0xb   :  { %p403_p3 = scmp.ne.s32.totalorder %s34_s22, %s402_s8  ;;  %p408_p5 = scmp.lt.s32.totalorder %s402_s8, %s402_s8 }
   0xd   :  { %p409_p6 = por %p408_p5, %p407_p4 }
   0xf   :  { %p410_p7 = pnand %p409_p6, %p403_p3 }
  0x11   :  { %413 = shalt.err (!%p410_p7)
}
  0x12   :  { %s488_s9 = smov 128   ;;  %s489_s10 = smov 8  }
  0x13   :  { %39 = dma.hbm_to_vmem [thread:$0]  %s611_s2, 1024, %s34_s22, [#allocation6], %s488_s9, %s488_s9, %s489_s10  }
  0x14   :  { %s414_s15 = scalar_lea.hbm %s609_s0, 256 }
  0x15   :  { %p415_p8 = scmp.ne.s32.totalorder %s609_s0, %s414_s15  ;;  %p418_p9 = scmp.lt.u32.totalorder %s414_s15, %s609_s0 }
  0x17   :  { %p420_p10 = pnand %p418_p9, %p415_p8 }
  0x19   :  { %423 = shalt.err (!%p420_p10)
}
  0x1a   :  { %s424_s20 = scalar_lea.vmem %s531_s24, 256  ;;  %p429_p12 = scmp.lt.s32.totalorder %s531_s24, %s531_s24 }
  0x1b   :  { %p425_p11 = scmp.ne.s32.totalorder %s531_s24, %s424_s20  ;;  %p430_p13 = scmp.lt.s32.totalorder %s424_s20, %s424_s20 }
  0x1d   :  { %p431_p0 = por %p430_p13, %p429_p12 }
  0x1f   :  { %p432_p1 = pnand %p431_p0, %p425_p11 }
  0x21   :  { %435 = shalt.err (!%p432_p1)
}
  0x22   :  { %25 = dma.hbm_to_vmem [thread:$0]  %s609_s0, 256, %s531_s24, [#allocation3], %s488_s9, %s488_s9, %s489_s10  }
  0x23   :  { %s490_s22 = smov [#allocation7]   ;;  %s436_s27 = scalar_lea.hbm %s613_s4, 512 }
  0x24   :  { %s47_s23 = sshll.u32 %s490_s22, 4  ;;  %p437_p2 = scmp.ne.s32.totalorder %s613_s4, %s436_s27  ;;  %s48_s23 = int_to_ptr.vmem [resolvable:$true] %s47_s23 }
  0x25   :  { %p440_p3 = scmp.lt.u32.totalorder %s436_s27, %s613_s4 }
  0x27   :  { %p442_p4 = pnand %p440_p3, %p437_p2 }
  0x29   :  { %445 = shalt.err (!%p442_p4)
}
  0x2a   :  { %s446_s8 = scalar_lea.vmem %s48_s23, 512  ;;  %p451_p6 = scmp.lt.s32.totalorder %s48_s23, %s48_s23 }
  0x2b   :  { %p447_p5 = scmp.ne.s32.totalorder %s48_s23, %s446_s8  ;;  %p452_p7 = scmp.lt.s32.totalorder %s446_s8, %s446_s8 }
  0x2d   :  { %p453_p8 = por %p452_p7, %p451_p6 }
  0x2f   :  { %p454_p9 = pnand %p453_p8, %p447_p5 }
  0x31   :  { %457 = shalt.err (!%p454_p9)
}
  0x32   :  { %53 = dma.hbm_to_vmem [thread:$0]  %s613_s4, 512, %s48_s23, [#allocation6], %s488_s9, %s488_s9, %s489_s10  }
  0x33   :  { %480 = dma.done.wait [#allocation3], 256  }
  0x34   :  { %481 = vsyncadd [#allocation3], 4294967040 }
  0x35   :  { %482 = dma.done.wait [#allocation6], 1536  }
  0x36   :  { %483 = vsyncadd [#allocation6], 4294965760  ;;  %v491_v0 = vmov 0.0|0.0   ;;  %vm492_vm0 = vmmov 0   ;;  %v493_v1 = vmov 0.0   ;;  %v67_v2 = vld [vmem:[#allocation5] sm:$0xff]  ;;  %v259_v25 = vlaneseq }
  0x37   :  { %376 = vmatprep.subr.bf16.mxu1 %v491_v0  ;;  %357 = vmatprep.mubr.msk.f32.mxu1 %vm492_vm0, %v493_v1  ;;  %v68_v3 = vld [vmem:[#allocation5 + $0x8] sm:$0xff]  ;;  %v169_v4 = vld [vmem:[#allocation7] sm:$0xff]  ;;  %v69_v7 = vld [vmem:[#allocation5 + $0x10] sm:$0xff]  ;;  %vm82_vm1 = vcmask 523264   ;;  %vm180_vm2 = vcmask 261120  }
  0x38   :  { %v360_v5 = vpack.c.bf16 %v68_v3, %v67_v2  ;;  %v170_v6 = vld [vmem:[#allocation7 + $0x8] sm:$0xff]  ;;  %v70_v8 = vld [vmem:[#allocation5 + $0x18] sm:$0xff]  ;;  %v171_v11 = vld [vmem:[#allocation7 + $0x10] sm:$0xff]  ;;  %v494_v23 = vmov 1966171168   ;;  %v260_v27 = vshrl.u32 %v259_v25, 7 }
  0x39   :  { %v377_v9 = vpack.c.bf16 %v170_v6, %v169_v4  ;;  %v364_v10 = vpack.c.bf16 %v70_v8, %v69_v7  ;;  %v172_v12 = vld [vmem:[#allocation7 + $0x18] sm:$0xff]  ;;  %v71_v13 = vld [vmem:[#allocation5 + $0x20] sm:$0xff]  ;;  %v72_v14 = vld [vmem:[#allocation5 + $0x28] sm:$0xff]  ;;  %v257_v24 = vunpack.c.l.s4 %v494_v23 }
  0x3a   :  { %361 = vmatprep.subr.bf16.mxu0 %v360_v5  ;;  %v380_v15 = vpack.c.bf16 %v172_v12, %v171_v11  ;;  %v65_v16 = vld [vmem:[#allocation2] sm:$0xff]  ;;  %v368_v17 = vpack.c.bf16 %v72_v14, %v71_v13  ;;  %v74_v19 = vld [vmem:[#allocation5 + $0x38] sm:$0xff]  ;;  %v280_v37 = vsub.s32 0, %v260_v27 }
  0x3b   :  { %363 = vmatpush3.bf16.msra.mxu0 %v360_v5  ;;  %378 = vmatpush3.bf16.msra.mxu1 %v377_v9  ;;  %v73_v18 = vld [vmem:[#allocation5 + $0x30] sm:$0xff]  ;;  %v66_v22 = vld [vmem:[#allocation2 + $0x8] sm:$0xff]  ;;  %v258_v26 = vunpack.c.0.s8 %v257_v24 }
  0x3c   :  { %365 = vmatprep.subr.bf16.mxu0 %v364_v10  ;;  %379 = vmatprep.subr.bf16.mxu1 %v491_v0  ;;  %v168_v20 = vld [vmem:[%s610_s1] sm:$0x3]  ;;  %v372_v21 = vpack.c.bf16 %v74_v19, %v73_v18 }
  0x3d   :  { %346 = vmatprep.mubr.msk.f32.mxu0 %vm82_vm1, %v65_v16  ;;  %v313_v28 = vld [vmem:[%s614_s5] ss:$0 sm:$0xff]  ;;  %v261_v31 = vsub.s32 %v258_v26, %v260_v27  ;;  %s495_s5 = smov [#allocation8]  }
  0x3e   :  { %v310_v35 = vld [vmem:[%s612_s3] ss:$0 sm:$0xff]  ;;  %s297_s15 = sshll.u32 %s495_s5, 4  ;;  %s298_s15 = int_to_ptr.vmem [resolvable:$true] %s297_s15 }
  0x3f   :  { %367 = vmatpush3.bf16.msra.mxu0 %v364_v10  ;;  %381 = vmatpush3.bf16.msra.mxu1 %v380_v15  ;;  %s458_s3 = scalar_lea.vmem %s298_s15, 256  ;;  %p463_p11 = scmp.lt.s32.totalorder %s298_s15, %s298_s15 }
  0x40   :  { %369 = vmatprep.subr.bf16.mxu0 %v368_v17  ;;  %p459_p10 = scmp.ne.s32.totalorder %s298_s15, %s458_s3  ;;  %p464_p12 = scmp.lt.s32.totalorder %s458_s3, %s458_s3 }
  0x42   :  { %358 = vmatmul.mubr.msk.f32.vlgmr.msra.gmra.mrb[0].mxu1 %vm180_vm2, %v168_v20  ;;  %p465_p13 = por %p464_p12, %p463_p11 }
  0x43   :  { %371 = vmatpush3.bf16.msra.mxu0 %v368_v17 }
  0x44   :  { %373 = vmatprep.subr.bf16.mxu0 %v372_v21  ;;  %p466_p0 = pnand %p465_p13, %p459_p10 }
  0x47   :  { %375 = vmatpush3.bf16.msra.mxu0 %v372_v21 }
  0x4a   :  { %347 = vmatmul.mubr.msk.f32.vlgmr.msra.gmra.mrb[0].mxu0 %vm82_vm1, %v66_v22 }
 0x115   :  { %v250_v29 = vpop.f32.mrb[0].mxu1 }
 0x116   :  { %v251_v30 = vadd.f32 %v313_v28, %v250_v29  ;;  %v359_v32 = vpop.f32.mrb[1].mxu1 }
 0x118   :  { %v254_v33 = vmax.f32 %v251_v30, 0.0 }
 0x11a   :  { %v262_v34 = vrot.slane %v254_v33, %v261_v31 }
 0x11c   :  { %v263_v36 = vcombine.high %v262_v34, %v262_v34  ;;  %v270_v38 = vrot.slane %v262_v34, %v261_v31 }
 0x11d   :  { %v348_v39 = vpop.f32.mrb[0].mxu0 }
 0x11e   :  { %v161_v40 = vadd.f32 %v348_v39, %v310_v35  ;;  %v277_v41 = vrot.slane %v263_v36, %v261_v31  ;;  %v155_v42 = vpop.f32.mrb[1].mxu0  ;;  %v281_v47 = vrot.slane %v270_v38, %v280_v37 }
 0x11f   :  { %v156_v43 = vadd.f32 %v310_v35, %v155_v42 }
 0x120   :  { %v165_v44 = vmax.f32 %v161_v40, 0.0  ;;  %v285_v45 = vrot.slane %v277_v41, %v280_v37 }
 0x121   :  { %v164_v46 = vmax.f32 %v156_v43, 0.0 }
 0x122   :  { %v289_v48 = vmul.f32 %v285_v45, %v165_v44 }
 0x123   :  { %v288_v49 = vmul.f32 %v281_v47, %v164_v46 }
 0x124   :  { %291 = vst [vmem:[#allocation8 + $0x8] sm:$0xff] %v289_v48 }
 0x125   :  { %290 = vst [vmem:[#allocation8] sm:$0xff] %v288_v49 }
 0x126   :  { %469 = shalt.err (!%p466_p0)
}
 0x127   :  { %s470_s18 = scalar_lea.hbm %s615_s6, 256 }
 0x128   :  { %p471_p1 = scmp.ne.s32.totalorder %s615_s6, %s470_s18  ;;  %p474_p2 = scmp.lt.u32.totalorder %s470_s18, %s615_s6 }
 0x12a   :  { %p476_p3 = pnand %p474_p2, %p471_p1 }
 0x12c   :  { %479 = shalt.err (!%p476_p3)
}
 0x12d   :  { %303 = dma.vmem_to_hbm [thread:$0]  %s298_s15, 256, %s615_s6, [#allocation4], %s488_s9, %s488_s9, %s489_s10  }
 0x12e   :  { %484 = dma.done.wait [#allocation4], 256  }
 0x12f   :  { %485 = vsyncadd [#allocation4], 4294967040 }
 0x130   :  { %307 = vsyncpa [#allocation3], 1 }
 0x131   :  { %308 = vsyncpa [#allocation6], 1 }
 0x132   :  { %309 = vsyncpa [#allocation4], 1 }

</bundles_post_ra>
